<compile_context>
chip_gen: v6e
topology: v6e:2x2x1
jax: 0.10.0
libtpu: 0.0.40
codegen_flags: <defaults>
</compile_context>

<pallas_src>
import functools
import math

import jax
import jax.numpy as jnp
import numpy as np
from jax.experimental import pallas as pl
from jax.experimental.pallas import tpu as pltpu


def _round_up(x, m):
    return (x + m - 1) // m * m


def _row_tiling(m):
    """Row padding + tile: single tile up to 512 rows, 512-row tiles beyond."""
    if m > 512:
        return _round_up(m, 512), 512
    m_pad = _round_up(m, 8)
    return m_pad, m_pad


def _pick_q_tile(sq, cap=256):
    """Largest query tile (multiple of 8, <= cap) dividing sq; else full sq."""
    if sq <= cap or sq % 8 != 0:
        return sq
    t = cap
    while t >= 8:
        if sq % t == 0:
            return t
        t -= 8
    return sq


# --------------------------------------------------------------------------
# Pallas kernels
# --------------------------------------------------------------------------
def _linear_kernel(x_ref, w_ref, o_ref):
    # x_ref: (tm, K) f32/bf16   w_ref: (K, Np) bf16   o_ref: (tm, Np) bf16/f32
    x = x_ref[...].astype(jnp.bfloat16)            # free VPU cast, no host pass
    o_ref[...] = jnp.dot(
        x, w_ref[...], preferred_element_type=jnp.float32
    ).astype(o_ref.dtype)


def _linear_bias_kernel(x_ref, w_ref, b_ref, o_ref):
    # bias added on the f32 accumulator (no bf16 VALU needed on v5e).
    x = x_ref[...].astype(jnp.bfloat16)
    acc = jnp.dot(x, w_ref[...], preferred_element_type=jnp.float32) + b_ref[...]
    o_ref[...] = acc.astype(o_ref.dtype)


def _qkv_kernel(xq_ref, xk_ref, xv_ref, w_ref, o_ref, *, d_pad):
    # Fused Q/K/V projection for one row tile.  Three dots against static
    # 128-aligned lane slices of the concatenated weight; one lane-dense
    # (tm, 3*d_pad) bf16 output store.
    for j, x_ref in enumerate((xq_ref, xk_ref, xv_ref)):
        x = x_ref[...].astype(jnp.bfloat16)
        acc = jnp.dot(x, w_ref[:, j * d_pad:(j + 1) * d_pad],
                      preferred_element_type=jnp.float32)
        o_ref[:, j * d_pad:(j + 1) * d_pad] = acc.astype(o_ref.dtype)


def _attn_kernel(q_ref, kt_ref, v_ref, o_ref, *, num_heads, d_k):
    # q_ref: (H, tq, dk) bf16    kt_ref: (H, dk, Sk) bf16 (K pre-transposed)
    # v_ref: (H, Sk, dk) bf16    o_ref: (tq, H*dk) bf16  (concat layout)
    # Scale 1/sqrt(dk) is folded into the Q weight -> no score multiply here.
    # TODO(synk): flash-style Sk tiling + online softmax for long sequences.
    for h in range(num_heads):
        s = jnp.dot(q_ref[h], kt_ref[h], preferred_element_type=jnp.float32)
        s = s - jnp.max(s, axis=-1, keepdims=True)     # stable softmax (f32)
        p = jnp.exp(s)
        p = p * pl.reciprocal(jnp.sum(p, axis=-1, keepdims=True), approx=True)
        o = jnp.dot(p.astype(jnp.bfloat16), v_ref[h],
                    preferred_element_type=jnp.float32)
        o_ref[:, h * d_k:(h + 1) * d_k] = o.astype(o_ref.dtype)


# --------------------------------------------------------------------------
# pallas_call wrappers
# --------------------------------------------------------------------------
def _linear(x2d, w_t, bias=None, out_dtype=jnp.bfloat16):
    """x2d: (M, K).  w_t: (K, Np) bf16.  bias: (1, Np) f32 or None.

    Returns (M, Np) `out_dtype` (row padding, if any, already stripped).
    """
    M, K = x2d.shape
    Np = w_t.shape[1]
    m_pad, tm = _row_tiling(M)

    x = x2d
    if m_pad != M:                                   # skip pad when aligned
        x = jnp.pad(x, ((0, m_pad - M), (0, 0)))

    in_specs = [
        pl.BlockSpec((tm, K), lambda i: (i, 0)),     # activation row tile
        pl.BlockSpec((K, Np), lambda i: (0, 0)),     # resident weight
    ]
    args = [x, w_t]
    kern = _linear_kernel
    bias_bytes = 0
    if bias is not None:
        in_specs.append(pl.BlockSpec((1, Np), lambda i: (0, 0)))
        args.append(bias)
        kern = _linear_bias_kernel
        bias_bytes = Np * 4

    x_b = x2d.dtype.itemsize
    o_b = jnp.dtype(out_dtype).itemsize
    out = pl.pallas_call(
        kern,
        out_shape=jax.ShapeDtypeStruct((m_pad, Np), out_dtype),
        grid_spec=pltpu.PrefetchScalarGridSpec(
            num_scalar_prefetch=0,
            grid=(m_pad // tm,),
            in_specs=in_specs,
            out_specs=pl.BlockSpec((tm, Np), lambda i: (i, 0)),
        ),
        compiler_params=pltpu.CompilerParams(
            dimension_semantics=("parallel",)),
        cost_estimate=pl.CostEstimate(
            flops=2 * m_pad * K * Np,
            transcendentals=0,
            bytes_accessed=m_pad * K * x_b + K * Np * 2 + m_pad * Np * o_b + bias_bytes,
        ),
    )(*args)
    return out if m_pad == M else out[:M]


def _qkv_projection(q2d, k2d, v2d, w_qkv, d_pad):
    """One fused pallas_call for the three projections (same row count).

    q2d/k2d/v2d: (M, K) f32.  w_qkv: (K, 3*d_pad) bf16 = [wq*scale | wk | wv].
    Returns (M, 3*d_pad) bf16.
    """
    M, K = q2d.shape
    Np = w_qkv.shape[1]
    m_pad, tm = _row_tiling(M)

    def pad_rows(x):
        return x if m_pad == M else jnp.pad(x, ((0, m_pad - M), (0, 0)))

    xq, xk, xv = pad_rows(q2d), pad_rows(k2d), pad_rows(v2d)

    out = pl.pallas_call(
        functools.partial(_qkv_kernel, d_pad=d_pad),
        out_shape=jax.ShapeDtypeStruct((m_pad, Np), jnp.bfloat16),
        grid_spec=pltpu.PrefetchScalarGridSpec(
            num_scalar_prefetch=0,
            grid=(m_pad // tm,),
            in_specs=[
                pl.BlockSpec((tm, K), lambda i: (i, 0)),
                pl.BlockSpec((tm, K), lambda i: (i, 0)),
                pl.BlockSpec((tm, K), lambda i: (i, 0)),
                pl.BlockSpec((K, Np), lambda i: (0, 0)),   # resident weight
            ],
            out_specs=pl.BlockSpec((tm, Np), lambda i: (i, 0)),
        ),
        compiler_params=pltpu.CompilerParams(
            dimension_semantics=("parallel",)),
        cost_estimate=pl.CostEstimate(
            flops=2 * m_pad * K * Np,
            transcendentals=0,
            bytes_accessed=3 * m_pad * K * 4 + K * Np * 2 + m_pad * Np * 2,
        ),
    )(xq, xk, xv, w_qkv)
    return out if m_pad == M else out[:M]


def _mha_attention(qh, kt, vh):
    """qh: (B,H,Sq,dk) bf16, kt: (B,H,dk,Sk) bf16, vh: (B,H,Sk,dk) bf16.

    Returns (B, Sq, H*dk) bf16 directly in concat layout.
    """
    B, H, Sq, dk = qh.shape
    Sk = kt.shape[3]
    D = H * dk
    tq = _pick_q_tile(Sq)

    kernel = functools.partial(_attn_kernel, num_heads=H, d_k=dk)
    return pl.pallas_call(
        kernel,
        out_shape=jax.ShapeDtypeStruct((B, Sq, D), jnp.bfloat16),
        grid_spec=pltpu.PrefetchScalarGridSpec(
            num_scalar_prefetch=0,
            grid=(B, Sq // tq),
            in_specs=[
                pl.BlockSpec((None, H, tq, dk), lambda b, s: (b, 0, s, 0)),
                pl.BlockSpec((None, H, dk, Sk), lambda b, s: (b, 0, 0, 0)),
                pl.BlockSpec((None, H, Sk, dk), lambda b, s: (b, 0, 0, 0)),
            ],
            out_specs=pl.BlockSpec((None, tq, D), lambda b, s: (b, s, 0)),
        ),
        compiler_params=pltpu.CompilerParams(
            dimension_semantics=("parallel", "parallel")),
        cost_estimate=pl.CostEstimate(
            flops=4 * B * H * Sq * Sk * dk,
            transcendentals=B * H * Sq * Sk,
            bytes_accessed=(qh.size + kt.size + vh.size) * 2 + B * Sq * D * 2,
        ),
    )(qh, kt, vh)


# --------------------------------------------------------------------------
# MultiHeadAttention module
# --------------------------------------------------------------------------
class MultiHeadAttention:
    def __init__(self, input_dim, bond_dim, num_heads, *, key):
        assert bond_dim % num_heads == 0
        self.input_dim = input_dim
        self.bond_dim = bond_dim
        self.num_heads = num_heads
        self.d_k = bond_dim // num_heads

        kq, kk, kv, kw, kb = jax.random.split(key, 5)

        # torch nn.Linear layout: weight (out_features, in_features),
        # init U(-1/sqrt(fan_in), 1/sqrt(fan_in)).
        bq = 1.0 / math.sqrt(input_dim)
        self.wq = jax.random.uniform(kq, (bond_dim, input_dim), jnp.float32, -bq, bq)
        self.wk = jax.random.uniform(kk, (bond_dim, input_dim), jnp.float32, -bq, bq)
        self.wv = jax.random.uniform(kv, (bond_dim, input_dim), jnp.float32, -bq, bq)
        bo = 1.0 / math.sqrt(bond_dim)
        self.wo = jax.random.uniform(kw, (input_dim, bond_dim), jnp.float32, -bo, bo)
        self.bo = jax.random.uniform(kb, (input_dim,), jnp.float32, -bo, bo)

        # One-time weight prep: transpose to (K, N), lane-pad N to a multiple
        # of 128 (skipped when already aligned), cast to bf16.  The 1/sqrt(dk)
        # attention scale is folded into the Q weight here (free at init).
        self.d_pad = _round_up(bond_dim, 128)
        self.i_pad = _round_up(input_dim, 128)
        scale = 1.0 / math.sqrt(self.d_k)

        def prep(w, n_pad):  # w: (N, K) torch layout -> (K, n_pad) bf16
            wt = jnp.transpose(w)
            if n_pad != wt.shape[1]:
                wt = jnp.pad(wt, ((0, 0), (0, n_pad - wt.shape[1])))
            return wt.astype(jnp.bfloat16)

        wq_t = prep(self.wq * scale, self.d_pad)   # scale folded in
        wk_t = prep(self.wk, self.d_pad)
        wv_t = prep(self.wv, self.d_pad)
        # Concatenated QKV weight for the fused projection kernel.
        self.w_qkv = jnp.concatenate([wq_t, wk_t, wv_t], axis=1)  # (K, 3*d_pad)
        # Per-projection views (fallback when Sq != Sk).
        self.wq_t, self.wk_t, self.wv_t = wq_t, wk_t, wv_t

        self.wo_t = prep(self.wo, self.i_pad)
        bo_p = self.bo
        if self.i_pad != input_dim:
            bo_p = jnp.pad(bo_p, (0, self.i_pad - input_dim))
        self.bo_p = bo_p.reshape(1, -1).astype(jnp.float32)

    def __call__(self, q, k, v, mask=None):
        if mask is not None:
            # TODO(synk): masked_fill path (scores.masked_fill(mask==0, -1e9)) not implemented.
            raise NotImplementedError("mask is not supported in this Pallas port")

        B, Sq, _ = q.shape
        Sk = k.shape[1]
        H, dk, D, dp = self.num_heads, self.d_k, self.bond_dim, self.d_pad

        q2d = q.reshape(B * Sq, self.input_dim)
        k2d = k.reshape(B * Sk, self.input_dim)
        v2d = v.reshape(B * Sk, self.input_dim)

        # --- Q/K/V projections: one fused pallas_call (bf16 out) -----------
        if q is k and k is v:
            # Self-attention: single wide (M,K)x(K,3*d_pad) matmul.
            fused = _linear(q2d, self.w_qkv)
            qp, kp, vp = fused[:, 0:D], fused[:, dp:dp + D], fused[:, 2 * dp:2 * dp + D]
        elif Sq == Sk:
            fused = _qkv_projection(q2d, k2d, v2d, self.w_qkv, dp)
            qp, kp, vp = fused[:, 0:D], fused[:, dp:dp + D], fused[:, 2 * dp:2 * dp + D]
        else:
            # TODO(synk): different q/kv sequence lengths fall back to three launches.
            qp = _linear(q2d, self.wq_t)[:, :D]
            kp = _linear(k2d, self.wk_t)[:, :D]
            vp = _linear(v2d, self.wv_t)[:, :D]

        # --- head split (bf16; K pre-transposed so the kernel never does) --
        qh = qp.reshape(B, Sq, H, dk).transpose(0, 2, 1, 3)    # (B,H,Sq,dk)
        kt = kp.reshape(B, Sk, H, dk).transpose(0, 2, 3, 1)    # (B,H,dk,Sk)
        vh = vp.reshape(B, Sk, H, dk).transpose(0, 2, 1, 3)    # (B,H,Sk,dk)

        # --- attention: output already in concat layout (B, Sq, D) bf16 ----
        ctx = _mha_attention(qh, kt, vh)

        # --- output projection (with bias), final result in f32 ------------
        out = _linear(ctx.reshape(B * Sq, D), self.wo_t, self.bo_p,
                      out_dtype=jnp.float32)
        if self.i_pad != self.input_dim:
            out = out[:, :self.input_dim]
        return out.reshape(B, Sq, self.input_dim)


# --------------------------------------------------------------------------
# Pure-JAX f32 reference (correctness check)
# --------------------------------------------------------------------------
def reference_forward(m, q, k, v):
    B, Sq, _ = q.shape
    Sk = k.shape[1]
    qh = (q @ m.wq.T).reshape(B, Sq, m.num_heads, m.d_k).transpose(0, 2, 1, 3)
    kh = (k @ m.wk.T).reshape(B, Sk, m.num_heads, m.d_k).transpose(0, 2, 1, 3)
    vh = (v @ m.wv.T).reshape(B, Sk, m.num_heads, m.d_k).transpose(0, 2, 1, 3)
    s = (qh @ kh.transpose(0, 1, 3, 2)) / math.sqrt(m.d_k)
    p = jax.nn.softmax(s, axis=-1)
    ctx = p @ vh
    concat = ctx.transpose(0, 2, 1, 3).reshape(B, Sq, m.bond_dim)
    return concat @ m.wo.T + m.bo


if __name__ == "__main__":
    B, S = 2, 8
    input_dim, bond_dim, num_heads = 32, 32, 4

    key = jax.random.PRNGKey(0)
    kq, kk, kv, kp = jax.random.split(key, 4)
    q = jax.random.normal(kq, (B, S, input_dim), jnp.float32)
    k = jax.random.normal(kk, (B, S, input_dim), jnp.float32)
    v = jax.random.normal(kv, (B, S, input_dim), jnp.float32)

    module = MultiHeadAttention(input_dim, bond_dim, num_heads, key=kp)

    # bf16 MXU inputs / intermediates with f32 accumulation -> loosened
    # tolerance vs the pure-f32 reference (documented).
    TOL = dict(rtol=2e-2, atol=2e-2)

    # 1) distinct q/k/v, equal seq lens -> fused QKV kernel (general path).
    out = jax.block_until_ready(module(q, k, v))
    assert out.shape == (B, S, input_dim)
    np.testing.assert_allclose(np.asarray(out),
                               np.asarray(reference_forward(module, q, k, v)), **TOL)

    # 2) self-attention (same tensor) -> single wide shared-activation matmul.
    out_sa = jax.block_until_ready(module(q, q, q))
    np.testing.assert_allclose(np.asarray(out_sa),
                               np.asarray(reference_forward(module, q, q, q)), **TOL)

    # 3) cross-attention with Sk != Sq -> per-projection fallback path.
    k2 = jax.random.normal(kk, (B, 2 * S, input_dim), jnp.float32)
    v2 = jax.random.normal(kv, (B, 2 * S, input_dim), jnp.float32)
    out_ca = jax.block_until_ready(module(q, k2, v2))
    np.testing.assert_allclose(np.asarray(out_ca),
                               np.asarray(reference_forward(module, q, k2, v2)), **TOL)

    print("KERNEL_OK")
</pallas_src>

<mosaic_0001>
module attributes {stable_mosaic.version = 11 : i64} {
  func.func @_qkv_kernel(%arg0: i32, %arg1: memref<16x32xf32, #tpu.memory_space<vmem>>, %arg2: memref<16x32xf32, #tpu.memory_space<vmem>>, %arg3: memref<16x32xf32, #tpu.memory_space<vmem>>, %arg4: memref<32x384xbf16, #tpu.memory_space<vmem>>, %arg5: memref<16x384xbf16, #tpu.memory_space<vmem>>) attributes {dimension_semantics = [#tpu.dimension_semantics<parallel>], iteration_bounds = array<i64: 1>, scalar_prefetch = 0 : i64, scratch_operands = 0 : i64, tpu.core_type = #tpu.core_type<tc>, window_params = [{transform_indices = @transform_0, window_bounds = array<i64: 16, 32>}, {transform_indices = @transform_1, window_bounds = array<i64: 16, 32>}, {transform_indices = @transform_2, window_bounds = array<i64: 16, 32>}, {pipeline_mode = #tpu.pipeline_mode<synchronous>, transform_indices = @transform_3, window_bounds = array<i64: 32, 384>}, {transform_indices = @transform_4, window_bounds = array<i64: 16, 384>}]} {
    %c0 = arith.constant 0 : index
    %c0_0 = arith.constant 0 : index
    %0 = vector.load %arg1[%c0, %c0_0] : memref<16x32xf32, #tpu.memory_space<vmem>>, vector<16x32xf32>
    %1 = arith.truncf %0 : vector<16x32xf32> to vector<16x32xbf16>
    %c0_1 = arith.constant 0 : index
    %c0_2 = arith.constant 0 : index
    %2 = vector.load %arg4[%c0_1, %c0_2] : memref<32x384xbf16, #tpu.memory_space<vmem>>, vector<32x128xbf16>
    %cst = arith.constant dense<0.000000e+00> : vector<16x128xf32>
    %3 = tpu.matmul %1, %2, %cst {dimension_numbers = #tpu.dot_dimension_numbers<[1], [0], [0], [1], [0, 0, 1, 1], [], []>} : vector<16x32xbf16>, vector<32x128xbf16>, vector<16x128xf32> -> vector<16x128xf32>
    %4 = arith.truncf %3 : vector<16x128xf32> to vector<16x128xbf16>
    %c0_3 = arith.constant 0 : index
    %c0_4 = arith.constant 0 : index
    %5 = vector.load %arg5[%c0_3, %c0_4] : memref<16x384xbf16, #tpu.memory_space<vmem>>, vector<16x128xbf16>
    tpu.vector_store %arg5[%c0_3, %c0_4], %4 {strides = array<i32>} : memref<16x384xbf16, #tpu.memory_space<vmem>>, vector<16x128xbf16>,
    %c0_5 = arith.constant 0 : index
    %c0_6 = arith.constant 0 : index
    %6 = vector.load %arg2[%c0_5, %c0_6] : memref<16x32xf32, #tpu.memory_space<vmem>>, vector<16x32xf32>
    %7 = arith.truncf %6 : vector<16x32xf32> to vector<16x32xbf16>
    %c0_7 = arith.constant 0 : index
    %c128 = arith.constant 128 : index
    %8 = vector.load %arg4[%c0_7, %c128] : memref<32x384xbf16, #tpu.memory_space<vmem>>, vector<32x128xbf16>
    %cst_8 = arith.constant dense<0.000000e+00> : vector<16x128xf32>
    %9 = tpu.matmul %7, %8, %cst_8 {dimension_numbers = #tpu.dot_dimension_numbers<[1], [0], [0], [1], [0, 0, 1, 1], [], []>} : vector<16x32xbf16>, vector<32x128xbf16>, vector<16x128xf32> -> vector<16x128xf32>
    %10 = arith.truncf %9 : vector<16x128xf32> to vector<16x128xbf16>
    %c0_9 = arith.constant 0 : index
    %c128_10 = arith.constant 128 : index
    %11 = vector.load %arg5[%c0_9, %c128_10] : memref<16x384xbf16, #tpu.memory_space<vmem>>, vector<16x128xbf16>
    tpu.vector_store %arg5[%c0_9, %c128_10], %10 {strides = array<i32>} : memref<16x384xbf16, #tpu.memory_space<vmem>>, vector<16x128xbf16>,
    %c0_11 = arith.constant 0 : index
    %c0_12 = arith.constant 0 : index
    %12 = vector.load %arg3[%c0_11, %c0_12] : memref<16x32xf32, #tpu.memory_space<vmem>>, vector<16x32xf32>
    %13 = arith.truncf %12 : vector<16x32xf32> to vector<16x32xbf16>
    %c0_13 = arith.constant 0 : index
    %c256 = arith.constant 256 : index
    %14 = vector.load %arg4[%c0_13, %c256] : memref<32x384xbf16, #tpu.memory_space<vmem>>, vector<32x128xbf16>
    %cst_14 = arith.constant dense<0.000000e+00> : vector<16x128xf32>
    %15 = tpu.matmul %13, %14, %cst_14 {dimension_numbers = #tpu.dot_dimension_numbers<[1], [0], [0], [1], [0, 0, 1, 1], [], []>} : vector<16x32xbf16>, vector<32x128xbf16>, vector<16x128xf32> -> vector<16x128xf32>
    %16 = arith.truncf %15 : vector<16x128xf32> to vector<16x128xbf16>
    %c0_15 = arith.constant 0 : index
    %c256_16 = arith.constant 256 : index
    %17 = vector.load %arg5[%c0_15, %c256_16] : memref<16x384xbf16, #tpu.memory_space<vmem>>, vector<16x128xbf16>
    tpu.vector_store %arg5[%c0_15, %c256_16], %16 {strides = array<i32>} : memref<16x384xbf16, #tpu.memory_space<vmem>>, vector<16x128xbf16>,
    return
  }
  func.func @transform_0(%arg0: i32) -> (i32, i32) {
    %c0_i32 = arith.constant 0 : i32
    %c0_i32_0 = arith.constant 0 : i32
    return %arg0, %c0_i32 : i32, i32
  }
  func.func @transform_1(%arg0: i32) -> (i32, i32) {
    %c0_i32 = arith.constant 0 : i32
    %c0_i32_0 = arith.constant 0 : i32
    return %arg0, %c0_i32 : i32, i32
  }
  func.func @transform_2(%arg0: i32) -> (i32, i32) {
    %c0_i32 = arith.constant 0 : i32
    %c0_i32_0 = arith.constant 0 : i32
    return %arg0, %c0_i32 : i32, i32
  }
  func.func @transform_3(%arg0: i32) -> (i32, i32) {
    %c0_i32 = arith.constant 0 : i32
    %c0_i32_0 = arith.constant 0 : i32
    %c0_i32_1 = arith.constant 0 : i32
    return %c0_i32, %c0_i32_0 : i32, i32
  }
  func.func @transform_4(%arg0: i32) -> (i32, i32) {
    %c0_i32 = arith.constant 0 : i32
    %c0_i32_0 = arith.constant 0 : i32
    return %arg0, %c0_i32 : i32, i32
  }
}

</mosaic_0001>

<bundles_post_ra>
// kernel: tpu_custom_call.1
= control target key start
LH: loop header
LB: loop body
LE: loop exit
PB: predicated region body
PF: predicated region fallthrough
CT: control target
= control target key end

     0   :  { %9 = vsyncpa [#allocation3], 0  ;;  %s552_s0 = inlined_call_operand.hbm [shape: f32[16,32], index: 0, kind: input, shape index: {}]   ;;  %s553_s1 = inlined_call_operand.hbm [shape: f32[16,32], index: 1, kind: input, shape index: {}]   ;;  %s554_s2 = inlined_call_operand.hbm [shape: f32[16,32], index: 2, kind: input, shape index: {}]   ;;  %s555_s3 = inlined_call_operand.hbm [shape: bf16[32,384], index: 3, kind: input, shape index: {}]   ;;  %s556_s4 = inlined_call_operand.hbm [shape: bf16[16,384], index: 4, kind: output, shape index: {}]  }
   0x1   :  { %10 = vsyncpa [#allocation6], 0 }
   0x2   :  { %11 = vsyncpa [#allocation9], 0 }
   0x3   :  { %12 = vsyncpa [#allocation4], 0  ;;  %s492_s15 = smov [#allocation5]   ;;  %s493_s17 = smov [#allocation2]  }
   0x4   :  { %s30_s16 = sshll.u32 %s492_s15, 4  ;;  %s18_s18 = sshll.u32 %s493_s17, 4  ;;  %s31_s16 = int_to_ptr.vmem [resolvable:$true] %s30_s16  ;;  %s19_s18 = int_to_ptr.vmem [resolvable:$true] %s18_s18 }
   0x5   :  { %s392_s19 = scalar_lea.vmem %s31_s16, 256  ;;  %p397_p1 = scmp.lt.s32.totalorder %s31_s16, %s31_s16 }
   0x6   :  { %p393_p0 = scmp.ne.s32.totalorder %s31_s16, %s392_s19  ;;  %p398_p2 = scmp.lt.s32.totalorder %s392_s19, %s392_s19 }
   0x8   :  { %p399_p3 = por %p398_p2, %p397_p1 }
   0xa   :  { %p400_p4 = pnand %p399_p3, %p393_p0 }
   0xc   :  { %403 = shalt.err (!%p400_p4)
}
   0xd   :  { %s494_s20 = smov 128   ;;  %s495_s21 = smov 8  }
   0xe   :  { %36 = dma.hbm_to_vmem [thread:$0]  %s553_s1, 256, %s31_s16, [#allocation6], %s494_s20, %s494_s20, %s495_s21  }
   0xf   :  { %s412_s24 = scalar_lea.vmem %s19_s18, 256  ;;  %p417_p6 = scmp.lt.s32.totalorder %s19_s18, %s19_s18 }
  0x10   :  { %p413_p5 = scmp.ne.s32.totalorder %s19_s18, %s412_s24  ;;  %p418_p7 = scmp.lt.s32.totalorder %s412_s24, %s412_s24 }
  0x12   :  { %p419_p8 = por %p418_p7, %p417_p6 }
  0x14   :  { %p420_p9 = pnand %p419_p8, %p413_p5 }
  0x16   :  { %423 = shalt.err (!%p420_p9)
}
  0x17   :  { %24 = dma.hbm_to_vmem [thread:$0]  %s552_s0, 256, %s19_s18, [#allocation3], %s494_s20, %s494_s20, %s495_s21  }
  0x18   :  { %s496_s27 = smov [#allocation7]   ;;  %s497_s29 = smov [#allocation8]  }
  0x19   :  { %s42_s28 = sshll.u32 %s496_s27, 4  ;;  %s54_s30 = sshll.u32 %s497_s29, 4  ;;  %s43_s28 = int_to_ptr.vmem [resolvable:$true] %s42_s28  ;;  %s55_s30 = int_to_ptr.vmem [resolvable:$true] %s54_s30 }
  0x1a   :  { %s432_s5 = scalar_lea.vmem %s43_s28, 256  ;;  %p437_p11 = scmp.lt.s32.totalorder %s43_s28, %s43_s28 }
  0x1b   :  { %p433_p10 = scmp.ne.s32.totalorder %s43_s28, %s432_s5  ;;  %p438_p12 = scmp.lt.s32.totalorder %s432_s5, %s432_s5 }
  0x1d   :  { %p439_p13 = por %p438_p12, %p437_p11 }
  0x1f   :  { %p440_p0 = pnand %p439_p13, %p433_p10 }
  0x21   :  { %443 = shalt.err (!%p440_p0)
}
  0x22   :  { %48 = dma.hbm_to_vmem [thread:$0]  %s554_s2, 256, %s43_s28, [#allocation6], %s494_s20, %s494_s20, %s495_s21  }
  0x23   :  { %s452_s7 = scalar_lea.vmem %s55_s30, 768  ;;  %p457_p2 = scmp.lt.s32.totalorder %s55_s30, %s55_s30 }
  0x24   :  { %p453_p1 = scmp.ne.s32.totalorder %s55_s30, %s452_s7  ;;  %p458_p3 = scmp.lt.s32.totalorder %s452_s7, %s452_s7 }
  0x26   :  { %p459_p4 = por %p458_p3, %p457_p2 }
  0x28   :  { %p460_p5 = pnand %p459_p4, %p453_p1 }
  0x2a   :  { %463 = shalt.err (!%p460_p5)
}
  0x2b   :  { %s498_s0 = smov 192   ;;  %s499_s8 = smov 12  }
  0x2c   :  { %60 = dma.hbm_to_vmem [thread:$0]  %s555_s3, 768, %s55_s30, [#allocation9], %s498_s0, %s498_s0, %s499_s8  }
  0x2d   :  { %484 = dma.done.wait [#allocation3], 256  }
  0x2e   :  { %485 = vsyncadd [#allocation3], 4294967040 }
  0x2f   :  { %486 = dma.done.wait [#allocation6], 512  }
  0x30   :  { %487 = vsyncadd [#allocation6], 4294966784 }
  0x31   :  { %488 = dma.done.wait [#allocation9], 768  }
  0x32   :  { %489 = vsyncadd [#allocation9], 4294966528  ;;  %v500_v0 = vmov 0.0   ;;  %vm501_vm0 = vmmov 0   ;;  %v378_v1 = vld [vmem:[#allocation8 + $0x18] ss:$12 sps:$4 sm:$0xff]  }
  0x33   :  { %343 = vmatprep.subr.bf16.mxu0 %v500_v0  ;;  %351 = vmatprep.subr.bf16.mxu1 %v500_v0  ;;  %v379_v2 = vld [vmem:[#allocation8 + $0x1c] ss:$12 sps:$4 sm:$0xff]   ;;  %v380_v3 = vld [vmem:[#allocation8] ss:$12 sps:$4 sm:$0xff]   ;;  %v74_v4 = vld [vmem:[#allocation2] sm:$0xff]  ;;  %vm93_vm1 = vcmask 261120  }
  0x34   :  { %347 = vmatprep.mubr.msk.bf16.mxu0 %vm501_vm0, %v500_v0  ;;  %355 = vmatprep.mubr.msk.bf16.mxu1 %vm501_vm0, %v500_v0  ;;  %v75_v5 = vld [vmem:[#allocation2 + $0x8] sm:$0xff]  ;;  %v381_v6 = vld [vmem:[#allocation8 + $0x4] ss:$12 sps:$4 sm:$0xff]   ;;  %v382_v8 = vld [vmem:[#allocation8 + $0x20] ss:$12 sps:$4 sm:$0xff]   ;;  %s502_s2 = smov [#allocation10]  }
  0x35   :  { %344 = vmatpush3.bf16.msra.mxu0 %v378_v1  ;;  %352 = vmatpush3.bf16.msra.mxu1 %v379_v2  ;;  %v76_v7 = vpack.c.bf16 %v75_v5, %v74_v4  ;;  %v148_v9 = vld [vmem:[#allocation5] sm:$0xff]  ;;  %v149_v10 = vld [vmem:[#allocation5 + $0x8] sm:$0xff]  ;;  %v221_v13 = vld [vmem:[#allocation7] sm:$0xff]  ;;  %s299_s3 = sshll.u32 %s502_s2, 4  ;;  %s300_s3 = int_to_ptr.vmem [resolvable:$true] %s299_s3 }
  0x36   :  { %345 = vmatprep.subr.bf16.mxu0 %v500_v0  ;;  %353 = vmatprep.subr.bf16.mxu1 %v500_v0  ;;  %v150_v11 = vpack.c.bf16 %v149_v10, %v148_v9  ;;  %v383_v12 = vld [vmem:[#allocation8 + $0x8] ss:$12 sps:$4 sm:$0xff]   ;;  %v222_v14 = vld [vmem:[#allocation7 + $0x8] sm:$0xff]  ;;  %s464_s11 = scalar_lea.vmem %s300_s3, 384  ;;  %p469_p7 = scmp.lt.s32.totalorder %s300_s3, %s300_s3 }
  0x37   :  { %v223_v15 = vpack.c.bf16 %v222_v14, %v221_v13  ;;  %p465_p6 = scmp.ne.s32.totalorder %s300_s3, %s464_s11  ;;  %p470_p8 = scmp.lt.s32.totalorder %s464_s11, %s464_s11 }
  0x39   :  { %346 = vmatpush3.bf16.msra.mxu0 %v380_v3  ;;  %354 = vmatpush3.bf16.msra.mxu1 %v381_v6  ;;  %p471_p9 = por %p470_p8, %p469_p7 }
  0x3a   :  { %359 = vmatprep.subr.bf16.mxu0 %v500_v0 }
  0x3b   :  { %p472_p10 = pnand %p471_p9, %p465_p6 }
  0x3c   :  { %348 = vmatmul.mubr.msk.bf16.vlgmr.msra.gmra.mxu0 %vm93_vm1, %v76_v7  ;;  %356 = vmatmul.mubr.msk.bf16.vlgmr.msra.gmra.mxu1 %vm93_vm1, %v150_v11 }
  0x3d   :  { %360 = vmatpush3.bf16.msra.mxu0 %v382_v8  ;;  %363 = vmatprep.mubr.msk.bf16.mxu0 %vm501_vm0, %v500_v0 }
  0x3e   :  { %361 = vmatprep.subr.bf16.mxu0 %v500_v0 }
  0x41   :  { %362 = vmatpush3.bf16.msra.mxu0 %v383_v12 }
  0x44   :  { %364 = vmatmul.mubr.msk.bf16.vlgmr.msra.gmra.mxu0 %vm93_vm1, %v223_v15 }
  0xfc   :  { %v131_v16 = vpop.f32.mrf.mxu0  ;;  %v204_v18 = vpop.f32.mrf.mxu1 }
  0xfd   :  { %v328_v17 = vpack.c.bf16 %v131_v16, %v131_v16  ;;  %v330_v20 = vpack.c.bf16 %v204_v18, %v204_v18 }
  0xfe   :  { %v349_v19 = vpop.f32.mrf.mxu0  ;;  %v357_v21 = vpop.f32.mrf.mxu1 }
  0xff   :  { %146 = vst [vmem:[#allocation10] sm:$0xf] %v328_v17  ;;  %219 = vst [vmem:[#allocation10 + $0x4] sm:$0xf] %v330_v20 }
 0x100   :  { %v134_v22 = vpop.f32.mrf.mxu0  ;;  %v207_v24 = vpop.f32.mrf.mxu1 }
 0x101   :  { %v329_v23 = vpack.c.bf16 %v134_v22, %v134_v22  ;;  %v331_v26 = vpack.c.bf16 %v207_v24, %v207_v24 }
 0x102   :  { %v350_v25 = vpop.f32.mrf.mxu0  ;;  %v358_v27 = vpop.f32.mrf.mxu1 }
 0x103   :  { %147 = vst [vmem:[#allocation10 + $0xc] sm:$0xf] %v329_v23  ;;  %220 = vst [vmem:[#allocation10 + $0x10] sm:$0xf] %v331_v26 }
 0x104   :  { %v277_v28 = vpop.f32.mrf.mxu0 }
 0x105   :  { %v332_v29 = vpack.c.bf16 %v277_v28, %v277_v28 }
 0x106   :  { %v365_v30 = vpop.f32.mrf.mxu0 }
 0x107   :  { %292 = vst [vmem:[#allocation10 + $0x8] sm:$0xf] %v332_v29 }
 0x108   :  { %v280_v31 = vpop.f32.mrf.mxu0 }
 0x109   :  { %v333_v32 = vpack.c.bf16 %v280_v31, %v280_v31 }
 0x10a   :  { %v366_v33 = vpop.f32.mrf.mxu0 }
 0x10b   :  { %293 = vst [vmem:[#allocation10 + $0x14] sm:$0xf] %v333_v32 }
 0x10c   :  { %475 = shalt.err (!%p472_p10)
}
 0x10d   :  { %305 = dma.vmem_to_hbm [thread:$0]  %s300_s3, 384, %s556_s4, [#allocation4], %s498_s0, %s498_s0, %s499_s8  }
 0x10e   :  { %490 = dma.done.wait [#allocation4], 384  }
 0x10f   :  { %491 = vsyncadd [#allocation4], 4294966912 }
 0x110   :  { %309 = vsyncpa [#allocation3], 1 }
 0x111   :  { %310 = vsyncpa [#allocation6], 1 }
 0x112   :  { %311 = vsyncpa [#allocation9], 1 }
 0x113   :  { %312 = vsyncpa [#allocation4], 1 }

</bundles_post_ra>
